<compile_context>
chip_gen: v7x
topology: tpu7x:2x2x1
jax: 0.10.0
libtpu: 0.0.40
codegen_flags: <defaults>
</compile_context>

<pallas_src>
import jax
import jax.numpy as jnp
from jax.experimental import pallas as pl
from jax.experimental.pallas import tpu as pltpu


def _gated_attn_kernel(x_ref, wab_ref, bab_ref, wc_ref, bc_ref, At_ref):
    """One N-tile of the gated-attention head.

    x_ref   : (bn, L)      input rows (streamed; last tile may contain garbage
                           rows past N -- safe because everything is row-wise and
                           out-of-bounds output rows are masked on writeback)
    wab_ref : (L, 2*Dp)    fused [Wa | Wb], pre-transposed, bf16
    bab_ref : (1, 2*Dp)    fused [ba | bb], f32
    wc_ref  : (C, Dp)      attention_c weight (PyTorch layout), bf16
    bc_ref  : (C, 1)       attention_c bias as a column, f32
    At_ref  : (C, bn)      output attention logits, transposed (lane-dense)
    """
    d2 = wab_ref.shape[1]
    dp = d2 // 2

    # Cast the streamed tile to bf16 for the MXU; accumulate in f32.
    x = x_ref[...].astype(wab_ref.dtype)
    h = jnp.dot(x, wab_ref[...], preferred_element_type=jnp.float32) + bab_ref[...]

    # Dp is a multiple of 128 (padded in prepare_attn_params), so these column
    # slices stay lane-aligned views (no hidden VMEM copies).
    a = jnp.tanh(h[:, :dp])                 # attention_a: Linear + Tanh    (EUP)
    b = jax.nn.sigmoid(h[:, dp:])           # attention_b: Linear + Sigmoid (EUP)
    gated = (a * b).astype(wc_ref.dtype)    # (bn, Dp)                      (VPU)

    # (C, Dp) x (bn, Dp) contracted on Dp -> (C, bn): negligible FLOPs vs. the gate
    # projection, and the result is lane-dense along N for unmasked stores.
    At = jax.lax.dot_general(
        wc_ref[...], gated,
        dimension_numbers=(((1,), (1,)), ((), ())),
        preferred_element_type=jnp.float32,
    ) + bc_ref[...]

    At_ref[...] = At.astype(At_ref.dtype)


def _round_up(v, m):
    return (v + m - 1) // m * m


def _vmem_limit_bytes():
    """Generation-aware VMEM limit: ~3/4 of physical capacity.

    64 MiB parts (v7x)  -> 48 MiB (headroom for compiler scratch / double buffers)
    128 MiB parts (v5e/v6e) -> 96 MiB (bigger N-tiles, fewer grid steps)
    """
    try:
        cap = int(pltpu.get_tpu_info().vmem_capacity_bytes)
    except Exception:
        cap = 64 * 1024 * 1024  # safe fallback for any generation
    return cap * 3 // 4


def _choose_block_n(N, L, d2, dp, C, x_itemsize, out_itemsize, vmem_limit_bytes):
    """Largest row-tile (multiple of 128, for lane-dense output blocks) in budget."""
    # Static operands (conservatively assume double-buffered).
    weight_bytes = 2 * (L * d2 * 2 + d2 * 4 + C * dp * 2 + C * 4)
    # Per-row VMEM: x tile (x2 buffers) + bf16 copy of x + h/a/b/gated
    # intermediates (f32 + bf16) + output tile (x2 buffers).
    per_row = (2 * x_itemsize * L      # x tile, double-buffered
               + 2 * L                 # bf16 cast of x
               + 4 * d2                # h (f32)
               + 4 * d2                # a, b (f32)
               + 4 * dp + 2 * dp       # gated f32 + bf16
               + 2 * out_itemsize * C) # output tile, double-buffered
    budget = max(vmem_limit_bytes - weight_bytes - (4 << 20), 1 << 20)
    bn = (budget // per_row) // 128 * 128
    bn = max(bn, 128)
    cap = 4096 if vmem_limit_bytes > (48 << 20) else 2048
    bn = min(bn, cap, _round_up(N, 128))
    return int(bn)


def prepare_attn_params(wa, ba, wb, bb, wc, bc, mxu_dtype=jnp.bfloat16):
    """Hoisted, one-time parameter preparation (do NOT call per forward).

    PyTorch nn.Linear layout in:
      wa, wb : [D, L], ba, bb : [D], wc : [C, D], bc : [C]
    Returns (wab [L, 2*Dp] bf16, bab [1, 2*Dp] f32, wc [C, Dp] bf16, bc [C, 1] f32),
    where Dp = D rounded up to a multiple of 128 (zero-padded; padded gate columns
    produce tanh(0)*sigmoid(0)=0 and meet zero wc columns, so the result is exact).
    """
    D = wa.shape[0]
    d_pad = _round_up(D, 128)
    if d_pad != D:
        pad = d_pad - D
        wa = jnp.pad(wa, ((0, pad), (0, 0)))
        wb = jnp.pad(wb, ((0, pad), (0, 0)))
        ba = jnp.pad(ba, ((0, pad),))
        bb = jnp.pad(bb, ((0, pad),))
        wc = jnp.pad(wc, ((0, 0), (0, pad)))
    wab = jnp.concatenate([wa, wb], axis=0).T.astype(mxu_dtype)          # (L, 2*Dp)
    bab = jnp.concatenate([ba, bb], axis=0)[None, :].astype(jnp.float32)  # (1, 2*Dp)
    wc_m = wc.astype(mxu_dtype)                                           # (C, Dp)
    bc_col = bc[:, None].astype(jnp.float32)                              # (C, 1)
    return wab, bab, wc_m, bc_col


def attn_net_gated(x, params, *, block_n=None):
    """Gated attention head forward pass.

    x      : [N, L]
    params : output of prepare_attn_params(...)
    Returns (A [N, C], x) — x is passed through unchanged (no HBM copy).
    """
    wab, bab, wc_m, bc_col = params
    N, L = x.shape
    d2 = wab.shape[1]
    dp = d2 // 2
    C = wc_m.shape[0]

    vmem_limit = _vmem_limit_bytes()
    if block_n is None:
        block_n = _choose_block_n(N, L, d2, dp, C,
                                  x.dtype.itemsize, x.dtype.itemsize, vmem_limit)

    # Ragged grid: no whole-array pad of x; the last (partial) tile's out-of-bounds
    # rows hold garbage, flow through row-wise math, and are dropped by the masked
    # output writeback.
    grid = (pl.cdiv(N, block_n),)
    rows = lambda i: (i, 0)        # x: tile along N
    full = lambda i: (0, 0)        # weights / biases: same full block every step
    cols = lambda i: (0, i)        # A^T: tile along N (lane axis)

    cost = pl.CostEstimate(
        flops=int(2 * N * L * d2 + 2 * N * dp * C),
        transcendentals=int(2 * N * dp),
        bytes_accessed=int(N * L * x.dtype.itemsize
                           + L * d2 * wab.dtype.itemsize
                           + C * dp * wc_m.dtype.itemsize
                           + N * C * x.dtype.itemsize),
    )

    A_t = pl.pallas_call(
        _gated_attn_kernel,
        out_shape=jax.ShapeDtypeStruct((C, N), x.dtype),
        grid_spec=pltpu.PrefetchScalarGridSpec(
            num_scalar_prefetch=0,
            grid=grid,
            in_specs=[
                pl.BlockSpec((block_n, L), rows),   # x tile
                pl.BlockSpec((L, d2), full),        # fused gate weights (bf16)
                pl.BlockSpec((1, d2), full),        # fused gate biases
                pl.BlockSpec((C, dp), full),        # attention_c weight (bf16)
                pl.BlockSpec((C, 1), full),         # attention_c bias (column)
            ],
            out_specs=pl.BlockSpec((C, block_n), cols),
        ),
        compiler_params=pltpu.CompilerParams(
            dimension_semantics=("parallel",),
            vmem_limit_bytes=int(vmem_limit),
        ),
        cost_estimate=cost,
    )(x, wab, bab, wc_m, bc_col)

    A = A_t.T   # (N, C); for C == 1 this is effectively a reshape
    # forward() returns (A, x): x is a pure pass-through, no kernel writeback.
    return A, x


if __name__ == "__main__":
    # Small shapes consistent with the module (real defaults are L=1024, D=256, C=1).
    # N=200 is deliberately not a multiple of the tile size to exercise the ragged
    # (masked) last block; D=128 keeps the gate split lane-aligned.
    N, L, D, C = 200, 256, 128, 1

    key = jax.random.PRNGKey(0)
    kx, ka, kab, kb, kbb, kc, kcb = jax.random.split(key, 7)

    x = jax.random.normal(kx, (N, L), dtype=jnp.float32)

    # PyTorch nn.Linear weight layout: [out_features, in_features].
    wa = jax.random.normal(ka, (D, L), dtype=jnp.float32) * 0.1
    ba = jax.random.normal(kab, (D,), dtype=jnp.float32) * 0.1
    wb = jax.random.normal(kb, (D, L), dtype=jnp.float32) * 0.1
    bb = jax.random.normal(kbb, (D,), dtype=jnp.float32) * 0.1
    wc = jax.random.normal(kc, (C, D), dtype=jnp.float32) * 0.1
    bc = jax.random.normal(kcb, (C,), dtype=jnp.float32) * 0.1

    # One-time (per-model) parameter prep: fuse, pad, pre-cast to bf16.
    params = prepare_attn_params(wa, ba, wb, bb, wc, bc)

    A, x_out = attn_net_gated(x, params)
    A = jax.block_until_ready(A)
    x_out = jax.block_until_ready(x_out)

    # Reference check in plain JAX (same math as the PyTorch forward, f32).
    a_ref = jnp.tanh(x @ wa.T + ba)
    b_ref = jax.nn.sigmoid(x @ wb.T + bb)
    A_ref = (a_ref * b_ref) @ wc.T + bc

    assert A.shape == (N, C), f"bad A shape {A.shape}"
    # Loosened tolerance: MXU operands are bf16 (f32 accumulation retained).
    assert jnp.allclose(A, A_ref, atol=3e-2, rtol=3e-2), "A mismatch"
    assert jnp.allclose(x_out, x), "x pass-through mismatch"

    print("KERNEL_OK")
</pallas_src>

<mosaic_0001>
module attributes {stable_mosaic.version = 11 : i64} {
  func.func @_gated_attn_kernel(%arg0: i32, %arg1: memref<256x256xf32, #tpu.memory_space<vmem>>, %arg2: memref<256x256xbf16, #tpu.memory_space<vmem>>, %arg3: memref<1x256xf32, #tpu.memory_space<vmem>>, %arg4: memref<1x128xbf16, #tpu.memory_space<vmem>>, %arg5: memref<1x1xf32, #tpu.memory_space<vmem>>, %arg6: memref<1x256xf32, #tpu.memory_space<vmem>>) attributes {dimension_semantics = [#tpu.dimension_semantics<parallel>], iteration_bounds = array<i64: 1>, scalar_prefetch = 0 : i64, scratch_operands = 0 : i64, tpu.core_type = #tpu.core_type<tc>, window_params = [{transform_indices = @transform_0, window_bounds = array<i64: 256, 256>}, {pipeline_mode = #tpu.pipeline_mode<synchronous>, transform_indices = @transform_1, window_bounds = array<i64: 256, 256>}, {pipeline_mode = #tpu.pipeline_mode<synchronous>, transform_indices = @transform_2, window_bounds = array<i64: 1, 256>}, {pipeline_mode = #tpu.pipeline_mode<synchronous>, transform_indices = @transform_3, window_bounds = array<i64: 1, 128>}, {pipeline_mode = #tpu.pipeline_mode<synchronous>, transform_indices = @transform_4, window_bounds = array<i64: 1, 1>}, {transform_indices = @transform_5, window_bounds = array<i64: 1, 256>}]} {
    %c0 = arith.constant 0 : index
    %c0_0 = arith.constant 0 : index
    %0 = vector.load %arg1[%c0, %c0_0] : memref<256x256xf32, #tpu.memory_space<vmem>>, vector<256x256xf32>
    %1 = arith.truncf %0 : vector<256x256xf32> to vector<256x256xbf16>
    %c0_1 = arith.constant 0 : index
    %c0_2 = arith.constant 0 : index
    %2 = vector.load %arg2[%c0_1, %c0_2] : memref<256x256xbf16, #tpu.memory_space<vmem>>, vector<256x256xbf16>
    %cst = arith.constant dense<0.000000e+00> : vector<256x256xf32>
    %3 = tpu.matmul %1, %2, %cst {dimension_numbers = #tpu.dot_dimension_numbers<[1], [0], [0], [1], [0, 0, 1, 1], [], []>} : vector<256x256xbf16>, vector<256x256xbf16>, vector<256x256xf32> -> vector<256x256xf32>
    %c0_3 = arith.constant 0 : index
    %c0_4 = arith.constant 0 : index
    %4 = vector.load %arg3[%c0_3, %c0_4] : memref<1x256xf32, #tpu.memory_space<vmem>>, vector<1x256xf32>
    %5 = vector.broadcast %4 : vector<1x256xf32> to vector<256x256xf32>
    %6 = arith.addf %3, %5 : vector<256x256xf32>
    %7 = vector.extract_strided_slice %6 {offsets = [0, 0], sizes = [256, 128], strides = [1, 1]} : vector<256x256xf32> to vector<256x128xf32>
    %8 = math.tanh %7 : vector<256x128xf32>
    %9 = vector.extract_strided_slice %6 {offsets = [0, 128], sizes = [256, 128], strides = [1, 1]} : vector<256x256xf32> to vector<256x128xf32>
    %10 = arith.negf %9 : vector<256x128xf32>
    %11 = math.exp %10 : vector<256x128xf32>
    %cst_5 = arith.constant 1.000000e+00 : f32
    %12 = vector.broadcast %cst_5 : f32 to vector<256x128xf32>
    %13 = arith.addf %12, %11 : vector<256x128xf32>
    %14 = arith.divf %12, %13 : vector<256x128xf32>
    %15 = arith.mulf %8, %14 : vector<256x128xf32>
    %16 = arith.truncf %15 : vector<256x128xf32> to vector<256x128xbf16>
    %c0_6 = arith.constant 0 : index
    %c0_7 = arith.constant 0 : index
    %17 = vector.load %arg4[%c0_6, %c0_7] : memref<1x128xbf16, #tpu.memory_space<vmem>>, vector<1x128xbf16>
    %cst_8 = arith.constant dense<0.000000e+00> : vector<1x256xf32>
    %18 = tpu.matmul %17, %16, %cst_8 {dimension_numbers = #tpu.dot_dimension_numbers<[1], [1], [0], [0], [0, 0, 1, 0], [], []>} : vector<1x128xbf16>, vector<256x128xbf16>, vector<1x256xf32> -> vector<1x256xf32>
    %c0_9 = arith.constant 0 : index
    %c0_10 = arith.constant 0 : index
    %19 = vector.load %arg5[%c0_9, %c0_10] : memref<1x1xf32, #tpu.memory_space<vmem>>, vector<1x1xf32>
    %20 = vector.broadcast %19 : vector<1x1xf32> to vector<1x256xf32>
    %21 = arith.addf %18, %20 : vector<1x256xf32>
    %c0_11 = arith.constant 0 : index
    %c0_12 = arith.constant 0 : index
    %22 = vector.load %arg6[%c0_11, %c0_12] : memref<1x256xf32, #tpu.memory_space<vmem>>, vector<1x256xf32>
    tpu.vector_store %arg6[%c0_11, %c0_12], %21 {strides = array<i32>} : memref<1x256xf32, #tpu.memory_space<vmem>>, vector<1x256xf32>,
    return
  }
  func.func @transform_0(%arg0: i32) -> (i32, i32) {
    %c0_i32 = arith.constant 0 : i32
    %c0_i32_0 = arith.constant 0 : i32
    return %arg0, %c0_i32 : i32, i32
  }
  func.func @transform_1(%arg0: i32) -> (i32, i32) {
    %c0_i32 = arith.constant 0 : i32
    %c0_i32_0 = arith.constant 0 : i32
    %c0_i32_1 = arith.constant 0 : i32
    return %c0_i32, %c0_i32_0 : i32, i32
  }
  func.func @transform_2(%arg0: i32) -> (i32, i32) {
    %c0_i32 = arith.constant 0 : i32
    %c0_i32_0 = arith.constant 0 : i32
    %c0_i32_1 = arith.constant 0 : i32
    return %c0_i32, %c0_i32_0 : i32, i32
  }
  func.func @transform_3(%arg0: i32) -> (i32, i32) {
    %c0_i32 = arith.constant 0 : i32
    %c0_i32_0 = arith.constant 0 : i32
    %c0_i32_1 = arith.constant 0 : i32
    return %c0_i32, %c0_i32_0 : i32, i32
  }
  func.func @transform_4(%arg0: i32) -> (i32, i32) {
    %c0_i32 = arith.constant 0 : i32
    %c0_i32_0 = arith.constant 0 : i32
    %c0_i32_1 = arith.constant 0 : i32
    return %c0_i32, %c0_i32_0 : i32, i32
  }
  func.func @transform_5(%arg0: i32) -> (i32, i32) {
    %c0_i32 = arith.constant 0 : i32
    %c0_i32_0 = arith.constant 0 : i32
    return %c0_i32, %arg0 : i32, i32
  }
}

</mosaic_0001>

<bundles_post_ra>
// kernel: tpu_custom_call.1
= control target key start
LH: loop header
LB: loop body
LE: loop exit
PB: predicated region body
PF: predicated region fallthrough
CT: control target
= control target key end

     0   :  { %s1551_s0 = inlined_call_operand.hbm [shape: f32[200,256], index: 0, kind: input, shape index: {}]   ;;  %s1552_s1 = inlined_call_operand.hbm [shape: bf16[256,256], index: 1, kind: input, shape index: {}]   ;;  %s1553_s2 = inlined_call_operand.vmem [shape: f32[1,256], index: 2, kind: input, shape index: {}]   ;;  %s1554_s3 = inlined_call_operand.vmem [shape: bf16[1,128], index: 3, kind: input, shape index: {}]   ;;  %s1555_s4 = inlined_call_operand.<no memory space> [shape: f32[1,1], index: 4, kind: input, shape index: {}]   ;;  %s1556_s5 = inlined_call_operand.hbm [shape: f32[1,200], index: 5, kind: output, shape index: {}]  }
   0x1   :  { %v10_v0 = vstv %s1555_s4 }
   0x2   :  { %11 = vst [vmem:[#allocation2] sm:$0x1] %v10_v0 }
   0x3   :  { %12 = vsyncpa [#allocation4], 0 }
   0x4   :  { %13 = vsyncpa [#allocation7], 0 }
   0x5   :  { %14 = vsyncpa [#allocation5], 0 }
   0x6   :  { %19 = vsyncadd [#allocation4], 1792  ;;  %s1312_s20 = smov [#allocation3]   ;;  %s1240_s24 = scalar_lea.hbm %s1551_s0, 6400 }
   0x7   :  { %s20_s21 = sshll.u32 %s1312_s20, 4  ;;  %p1241_p0 = scmp.ne.s32.totalorder %s1551_s0, %s1240_s24  ;;  %s21_s21 = int_to_ptr.vmem [resolvable:$true] %s20_s21 }
   0x8   :  { %p1244_p1 = scmp.lt.u32.totalorder %s1240_s24, %s1551_s0 }
   0xa   :  { %p1246_p2 = pnand %p1244_p1, %p1241_p0 }
   0xc   :  { %1249 = shalt.err (!%p1246_p2)
}
   0xd   :  { %s1250_s4 = scalar_lea.vmem %s21_s21, 6400  ;;  %s1254_s29 = scalar_lea.vmem %s21_s21, 8192 }
   0xe   :  { %p1251_p3 = scmp.ne.s32.totalorder %s21_s21, %s1250_s4  ;;  %p1255_p4 = scmp.lt.s32.totalorder %s21_s21, %s21_s21 }
   0xf   :  { %p1256_p5 = scmp.lt.s32.totalorder %s1254_s29, %s1250_s4 }
  0x11   :  { %p1257_p6 = por %p1256_p5, %p1255_p4 }
  0x13   :  { %p1258_p7 = pnand %p1257_p6, %p1251_p3 }
  0x15   :  { %1261 = shalt.err (!%p1258_p7)
}
  0x16   :  { %s1313_s30 = smov 256   ;;  %s1314_s6 = smov 16  }
  0x17   :  { %26 = dma.hbm_to_vmem [thread:$0]  %s1551_s0, 6400, %s21_s21, [#allocation4], %s1313_s30, %s1313_s30, %s1314_s6  }
  0x18   :  { %s1315_s9 = smov [#allocation6]   ;;  %s1262_s13 = scalar_lea.hbm %s1552_s1, 4096 }
  0x19   :  { %s32_s10 = sshll.u32 %s1315_s9, 4  ;;  %p1263_p8 = scmp.ne.s32.totalorder %s1552_s1, %s1262_s13  ;;  %s33_s10 = int_to_ptr.vmem [resolvable:$true] %s32_s10 }
  0x1a   :  { %p1266_p9 = scmp.lt.u32.totalorder %s1262_s13, %s1552_s1 }
  0x1c   :  { %p1268_p10 = pnand %p1266_p9, %p1263_p8 }
  0x1e   :  { %1271 = shalt.err (!%p1268_p10)
}
  0x1f   :  { %s1272_s18 = scalar_lea.vmem %s33_s10, 4096  ;;  %p1277_p12 = scmp.lt.s32.totalorder %s33_s10, %s33_s10 }
  0x20   :  { %p1273_p11 = scmp.ne.s32.totalorder %s33_s10, %s1272_s18  ;;  %p1278_p13 = scmp.lt.s32.totalorder %s1272_s18, %s1272_s18 }
  0x22   :  { %p1279_p0 = por %p1278_p13, %p1277_p12 }
  0x24   :  { %p1280_p1 = pnand %p1279_p0, %p1273_p11 }
  0x26   :  { %1283 = shalt.err (!%p1280_p1)
}
  0x27   :  { %s1316_s0 = smov 128   ;;  %s1317_s19 = smov 8  }
  0x28   :  { %38 = dma.hbm_to_vmem [thread:$0]  %s1552_s1, 4096, %s33_s10, [#allocation7], %s1316_s0, %s1316_s0, %s1317_s19  }
  0x29   :  { %1306 = dma.done.wait [#allocation4], 8192  }
  0x2a   :  { %1307 = vsyncadd [#allocation4], 4294959104 }
  0x2b   :  { %1308 = dma.done.wait [#allocation7], 4096  }
  0x2c   :  { %1309 = vsyncadd [#allocation7], 4294963200  ;;  %v1000_v1 = vld [vmem:[#allocation6 + $0x4] ss:$8 sps:$4 sm:$0xff]   ;;  %v1002_v2 = vld [vmem:[#allocation6] ss:$8 sps:$4 sm:$0xff]  }
  0x2d   :  { %352 = vmatprep.subr.bf16.mxu0 %v1000_v1  ;;  %v1003_v3 = vld [vmem:[#allocation6 + $0x14] ss:$8 sps:$4 sm:$0xff]   ;;  %v1005_v4 = vld [vmem:[#allocation6 + $0x10] ss:$8 sps:$4 sm:$0xff]   ;;  %v1006_v5 = vld [vmem:[#allocation6 + $0x24] ss:$8 sps:$4 sm:$0xff]  }
  0x2e   :  { %353 = vmatpush1.bf16.msra.mxu0 %v1002_v2  ;;  %v1008_v6 = vld [vmem:[#allocation6 + $0x20] ss:$8 sps:$4 sm:$0xff]   ;;  %v1009_v7 = vld [vmem:[#allocation6 + $0x34] ss:$8 sps:$4 sm:$0xff]   ;;  %v1011_v8 = vld [vmem:[#allocation6 + $0x30] ss:$8 sps:$4 sm:$0xff]  }
  0x2f   :  { %354 = vmatprep.subr.bf16.mxu0 %v1003_v3  ;;  %v1012_v9 = vld [vmem:[#allocation6 + $0x44] ss:$8 sps:$4 sm:$0xff]   ;;  %v1014_v10 = vld [vmem:[#allocation6 + $0x40] ss:$8 sps:$4 sm:$0xff]   ;;  %v1015_v11 = vld [vmem:[#allocation6 + $0x54] ss:$8 sps:$4 sm:$0xff]  }
  0x30   :  { %v1017_v12 = vld [vmem:[#allocation6 + $0x50] ss:$8 sps:$4 sm:$0xff]   ;;  %v1018_v13 = vld [vmem:[#allocation6 + $0x64] ss:$8 sps:$4 sm:$0xff]   ;;  %v1020_v17 = vld [vmem:[#allocation6 + $0x60] ss:$8 sps:$4 sm:$0xff]  }
  0x31   :  { %v53_v14 = vld [vmem:[#allocation3 + $0x8] sm:$0xff]  ;;  %v55_v15 = vld [vmem:[#allocation3 + $0x18] sm:$0xff]  ;;  %v52_v36 = vld [vmem:[#allocation3] sm:$0xff] }
  0x32   :  { %355 = vmatpush1.bf16.msra.mxu0 %v1005_v4  ;;  %v117_v16 = vpack.c.bf16 %v55_v15, %v53_v14  ;;  %v1021_v18 = vld [vmem:[#allocation6 + $0x74] ss:$8 sps:$4 sm:$0xff]   ;;  %v1023_v19 = vld [vmem:[#allocation6 + $0x70] ss:$8 sps:$4 sm:$0xff]   ;;  %v1024_v20 = vld [vmem:[#allocation6 + $0x84] ss:$8 sps:$4 sm:$0xff]  }
  0x33   :  { %356 = vmatprep.subr.bf16.mxu0 %v1006_v5  ;;  %v1026_v21 = vld [vmem:[#allocation6 + $0x80] ss:$8 sps:$4 sm:$0xff]   ;;  %v1027_v22 = vld [vmem:[#allocation6 + $0x94] ss:$8 sps:$4 sm:$0xff]   ;;  %v1029_v23 = vld [vmem:[#allocation6 + $0x90] ss:$8 sps:$4 sm:$0xff]  }
  0x34   :  { %384 = vmatprep.mubr.bf16.mxu0 %v117_v16  ;;  %v1030_v24 = vld [vmem:[#allocation6 + $0xa4] ss:$8 sps:$4 sm:$0xff]   ;;  %v1032_v25 = vld [vmem:[#allocation6 + $0xa0] ss:$8 sps:$4 sm:$0xff]   ;;  %v1033_v26 = vld [vmem:[#allocation6 + $0xb4] ss:$8 sps:$4 sm:$0xff]  }
  0x35   :  { %v1035_v27 = vld [vmem:[#allocation6 + $0xb0] ss:$8 sps:$4 sm:$0xff]   ;;  %v1036_v28 = vld [vmem:[#allocation6 + $0xc4] ss:$8 sps:$4 sm:$0xff]   ;;  %v1038_v29 = vld [vmem:[#allocation6 + $0xc0] ss:$8 sps:$4 sm:$0xff]  }
  0x36   :  { %357 = vmatpush1.bf16.msra.mxu0 %v1008_v6  ;;  %v1039_v30 = vld [vmem:[#allocation6 + $0xd4] ss:$8 sps:$4 sm:$0xff]   ;;  %v1041_v31 = vld [vmem:[#allocation6 + $0xd0] ss:$8 sps:$4 sm:$0xff]   ;;  %v1042_v32 = vld [vmem:[#allocation6 + $0xe4] ss:$8 sps:$4 sm:$0xff]  }
  0x37   :  { %358 = vmatprep.subr.bf16.mxu0 %v1009_v7  ;;  %v1044_v33 = vld [vmem:[#allocation6 + $0xe0] ss:$8 sps:$4 sm:$0xff]   ;;  %v1045_v34 = vld [vmem:[#allocation6 + $0xf4] ss:$8 sps:$4 sm:$0xff]   ;;  %v1047_v35 = vld [vmem:[#allocation6 + $0xf0] ss:$8 sps:$4 sm:$0xff]  }
  0x38   :  { %v54_v37 = vld [vmem:[#allocation3 + $0x10] sm:$0xff]  ;;  %v57_v38 = vld [vmem:[#allocation3 + $0x28] sm:$0xff]  ;;  %v59_v39 = vld [vmem:[#allocation3 + $0x38] sm:$0xff] }
  0x39   :  { %v116_v40 = vpack.c.bf16 %v54_v37, %v52_v36  ;;  %v119_v41 = vpack.c.bf16 %v59_v39, %v57_v38  ;;  %v56_v42 = vld [vmem:[#allocation3 + $0x20] sm:$0xff]  ;;  %v58_v43 = vld [vmem:[#allocation3 + $0x30] sm:$0xff]  ;;  %v61_v44 = vld [vmem:[#allocation3 + $0x48] sm:$0xff] }
  0x3a   :  { %359 = vmatpush1.bf16.msra.mxu0 %v1011_v8  ;;  %v63_v45 = vld [vmem:[#allocation3 + $0x58] sm:$0xff]  ;;  %v118_v46 = vpack.c.bf16 %v58_v43, %v56_v42  ;;  %v60_v48 = vld [vmem:[#allocation3 + $0x40] sm:$0xff]  ;;  %v62_v49 = vld [vmem:[#allocation3 + $0x50] sm:$0xff] }
  0x3b   :  { %360 = vmatprep.subr.bf16.mxu0 %v1012_v9  ;;  %v121_v47 = vpack.c.bf16 %v63_v45, %v61_v44  ;;  %v65_v50 = vld [vmem:[#allocation3 + $0x68] sm:$0xff]  ;;  %v67_v51 = vld [vmem:[#allocation3 + $0x78] sm:$0xff]  ;;  %v120_v52 = vpack.c.bf16 %v62_v49, %v60_v48  ;;  %v64_v54 = vld [vmem:[#allocation3 + $0x60] sm:$0xff] }
  0x3c   :  { %v123_v53 = vpack.c.bf16 %v67_v51, %v65_v50  ;;  %v66_v55 = vld [vmem:[#allocation3 + $0x70] sm:$0xff]  ;;  %v69_v56 = vld [vmem:[#allocation3 + $0x88] sm:$0xff]  ;;  %v71_v57 = vld [vmem:[#allocation3 + $0x98] sm:$0xff] }
  0x3d   :  { %v122_v58 = vpack.c.bf16 %v66_v55, %v64_v54  ;;  %v125_v59 = vpack.c.bf16 %v71_v57, %v69_v56  ;;  %v68_v60 = vld [vmem:[#allocation3 + $0x80] sm:$0xff]  ;;  %v70_v61 = vld [vmem:[#allocation3 + $0x90] sm:$0xff]  ;;  %v73_v62 = vld [vmem:[#allocation3 + $0xa8] sm:$0xff] }
  0x3e   :  { %361 = vmatpush1.bf16.msra.mxu0 %v1014_v10  ;;  %v75_v63 = vld [vmem:[#allocation3 + $0xb8] sm:$0xff]  ;;  %v124_v0 = vpack.c.bf16 %v70_v61, %v68_v60  ;;  %v72_v2 = vld [vmem:[#allocation3 + $0xa0] sm:$0xff]  ;;  %v74_v3 = vld [vmem:[#allocation3 + $0xb0] sm:$0xff] }
  0x3f   :  { %362 = vmatprep.subr.bf16.mxu0 %v1015_v11  ;;  %v127_v1 = vpack.c.bf16 %v75_v63, %v73_v62  ;;  %v77_v4 = vld [vmem:[#allocation3 + $0xc8] sm:$0xff]  ;;  %v79_v5 = vld [vmem:[#allocation3 + $0xd8] sm:$0xff]  ;;  %v126_v6 = vpack.c.bf16 %v74_v3, %v72_v2  ;;  %v76_v8 = vld [vmem:[#allocation3 + $0xc0] sm:$0xff] }
  0x40   :  { %v129_v7 = vpack.c.bf16 %v79_v5, %v77_v4  ;;  %v78_v9 = vld [vmem:[#allocation3 + $0xd0] sm:$0xff]  ;;  %v81_v10 = vld [vmem:[#allocation3 + $0xe8] sm:$0xff]  ;;  %v83_v11 = vld [vmem:[#allocation3 + $0xf8] sm:$0xff] }
  0x41   :  { %v80_v14 = vld [vmem:[#allocation3 + $0xe0] sm:$0xff]  ;;  %v82_v15 = vld [vmem:[#allocation3 + $0xf0] sm:$0xff]  ;;  %v85_v16 = vld [vmem:[#allocation3 + $0x108] sm:$0xff] }
  0x42   :  { %363 = vmatpush1.bf16.msra.mxu0 %v1017_v12  ;;  %v128_v12 = vpack.c.bf16 %v78_v9, %v76_v8  ;;  %v96_v38 = vld [vmem:[#allocation3 + $0x160] sm:$0xff]  ;;  %v98_v39 = vld [vmem:[#allocation3 + $0x170] sm:$0xff] }
  0x43   :  { %364 = vmatprep.subr.bf16.mxu0 %v1018_v13  ;;  %v131_v13 = vpack.c.bf16 %v83_v11, %v81_v10  ;;  %v138_v42 = vpack.c.bf16 %v98_v39, %v96_v38  ;;  %v100_v44 = vld [vmem:[#allocation3 + $0x180] sm:$0xff]  ;;  %v102_v45 = vld [vmem:[#allocation3 + $0x190] sm:$0xff] }
  0x44   :  { %v140_v48 = vpack.c.bf16 %v102_v45, %v100_v44  ;;  %v104_v50 = vld [vmem:[#allocation3 + $0x1a0] sm:$0xff]  ;;  %v106_v51 = vld [vmem:[#allocation3 + $0x1b0] sm:$0xff] }
  0x45   :  { %v142_v54 = vpack.c.bf16 %v106_v51, %v104_v50  ;;  %v108_v56 = vld [vmem:[#allocation3 + $0x1c0] sm:$0xff]  ;;  %v110_v57 = vld [vmem:[#allocation3 + $0x1d0] sm:$0xff] }
  0x46   :  { %365 = vmatpush1.bf16.msra.mxu0 %v1020_v17  ;;  %v87_v17 = vld [vmem:[#allocation3 + $0x118] sm:$0xff]  ;;  %v144_v60 = vpack.c.bf16 %v110_v57, %v108_v56  ;;  %v112_v62 = vld [vmem:[#allocation3 + $0x1e0] sm:$0xff]  ;;  %v114_v63 = vld [vmem:[#allocation3 + $0x1f0] sm:$0xff] }
  0x47   :  { %366 = vmatprep.subr.bf16.mxu0 %v1021_v18  ;;  %v130_v18 = vpack.c.bf16 %v82_v15, %v80_v14  ;;  %v180_v4 = vld [vmem:[%s1553_s2] sm:$0x3] }
  0x4a   :  { %367 = vmatpush1.bf16.msra.mxu0 %v1023_v19  ;;  %v133_v19 = vpack.c.bf16 %v87_v17, %v85_v16 }
  0x4b   :  { %368 = vmatprep.subr.bf16.mxu0 %v1024_v20  ;;  %v84_v20 = vld [vmem:[#allocation3 + $0x100] sm:$0xff] }
  0x4e   :  { %369 = vmatpush1.bf16.msra.mxu0 %v1026_v21  ;;  %v86_v21 = vld [vmem:[#allocation3 + $0x110] sm:$0xff] }
  0x4f   :  { %370 = vmatprep.subr.bf16.mxu0 %v1027_v22  ;;  %v89_v22 = vld [vmem:[#allocation3 + $0x128] sm:$0xff] }
  0x52   :  { %371 = vmatpush1.bf16.msra.mxu0 %v1029_v23  ;;  %v91_v23 = vld [vmem:[#allocation3 + $0x138] sm:$0xff] }
  0x53   :  { %372 = vmatprep.subr.bf16.mxu0 %v1030_v24  ;;  %v132_v24 = vpack.c.bf16 %v86_v21, %v84_v20 }
  0x56   :  { %373 = vmatpush1.bf16.msra.mxu0 %v1032_v25  ;;  %v135_v25 = vpack.c.bf16 %v91_v23, %v89_v22 }
  0x57   :  { %374 = vmatprep.subr.bf16.mxu0 %v1033_v26  ;;  %v88_v26 = vld [vmem:[#allocation3 + $0x120] sm:$0xff] }
  0x5a   :  { %375 = vmatpush1.bf16.msra.mxu0 %v1035_v27  ;;  %v90_v27 = vld [vmem:[#allocation3 + $0x130] sm:$0xff] }
  0x5b   :  { %376 = vmatprep.subr.bf16.mxu0 %v1036_v28  ;;  %v93_v28 = vld [vmem:[#allocation3 + $0x148] sm:$0xff] }
  0x5e   :  { %377 = vmatpush1.bf16.msra.mxu0 %v1038_v29  ;;  %v95_v29 = vld [vmem:[#allocation3 + $0x158] sm:$0xff] }
  0x5f   :  { %378 = vmatprep.subr.bf16.mxu0 %v1039_v30  ;;  %v134_v30 = vpack.c.bf16 %v90_v27, %v88_v26 }
  0x62   :  { %379 = vmatpush1.bf16.msra.mxu0 %v1041_v31  ;;  %v137_v31 = vpack.c.bf16 %v95_v29, %v93_v28 }
  0x63   :  { %380 = vmatprep.subr.bf16.mxu0 %v1042_v32  ;;  %v92_v32 = vld [vmem:[#allocation3 + $0x140] sm:$0xff] }
  0x66   :  { %381 = vmatpush1.bf16.msra.mxu0 %v1044_v33  ;;  %v94_v33 = vld [vmem:[#allocation3 + $0x150] sm:$0xff] }
  0x67   :  { %382 = vmatprep.subr.bf16.mxu0 %v1045_v34  ;;  %v97_v34 = vld [vmem:[#allocation3 + $0x168] sm:$0xff]  ;;  %v136_v36 = vpack.c.bf16 %v94_v33, %v92_v32 }
  0x6a   :  { %383 = vmatpush1.bf16.msra.mxu0 %v1047_v35  ;;  %v99_v35 = vld [vmem:[#allocation3 + $0x178] sm:$0xff] }
  0x6b   :  { %v139_v37 = vpack.c.bf16 %v99_v35, %v97_v34 }
  0x6d   :  { %385 = vmatmul.mubr.bf16.vlgmr.msra.gmra.mrb[0].mxu0 %v116_v40  ;;  %v101_v40 = vld [vmem:[#allocation3 + $0x188] sm:$0xff] }
  0x6e   :  { %394 = vmatprep.mubr.bf16.mxu0 %v119_v41  ;;  %v103_v41 = vld [vmem:[#allocation3 + $0x198] sm:$0xff] }
  0x6f   :  { %v141_v43 = vpack.c.bf16 %v103_v41, %v101_v40 }
  0x75   :  { %395 = vmatmul.mubr.bf16.gmra.mrb[4].mxu0 %v118_v46  ;;  %v105_v46 = vld [vmem:[#allocation3 + $0x1a8] sm:$0xff] }
  0x76   :  { %404 = vmatprep.mubr.bf16.mxu0 %v121_v47  ;;  %v107_v47 = vld [vmem:[#allocation3 + $0x1b8] sm:$0xff] }
  0x77   :  { %v143_v49 = vpack.c.bf16 %v107_v47, %v105_v46 }
  0x7d   :  { %405 = vmatmul.mubr.bf16.gmra.mrb[8].mxu0 %v120_v52  ;;  %v109_v52 = vld [vmem:[#allocation3 + $0x1c8] sm:$0xff] }
  0x7e   :  { %414 = vmatprep.mubr.bf16.mxu0 %v123_v53  ;;  %v111_v53 = vld [vmem:[#allocation3 + $0x1d8] sm:$0xff] }
  0x7f   :  { %v145_v55 = vpack.c.bf16 %v111_v53, %v109_v52  ;;  %v1407_v53 = vld [vmem:[%s1554_s3] sm:$0x1]  ;;  %s1320_s3 = smov [#allocation8]  }
  0x80   :  { %988 = vmatprep.mubr.bf16.mxu1 %v1407_v53  ;;  %s898_s24 = sshll.u32 %s1320_s3, 4  ;;  %s899_s24 = int_to_ptr.vmem [resolvable:$true] %s898_s24 }
  0x81   :  { %s1284_s25 = scalar_lea.vmem %s899_s24, 32  ;;  %p1289_p3 = scmp.lt.s32.totalorder %s899_s24, %s899_s24 }
  0x82   :  { %p1285_p2 = scmp.ne.s32.totalorder %s899_s24, %s1284_s25  ;;  %p1290_p4 = scmp.lt.s32.totalorder %s1284_s25, %s1284_s25 }
  0x84   :  { %p1291_p5 = por %p1290_p4, %p1289_p3 }
  0x85   :  { %415 = vmatmul.mubr.bf16.gmra.mrb[12].mxu0 %v122_v58  ;;  %v113_v58 = vld [vmem:[#allocation3 + $0x1e8] sm:$0xff] }
  0x86   :  { %424 = vmatprep.mubr.bf16.mxu0 %v125_v59  ;;  %v115_v59 = vld [vmem:[#allocation3 + $0x1f8] sm:$0xff]  ;;  %p1292_p6 = pnand %p1291_p5, %p1285_p2 }
  0x87   :  { %v147_v61 = vpack.c.bf16 %v115_v59, %v113_v58 }
  0x8d   :  { %425 = vmatmul.mubr.bf16.gmra.mrb[16].mxu0 %v124_v0  ;;  %v146_v0 = vpack.c.bf16 %v114_v63, %v112_v62 }
  0x8e   :  { %434 = vmatprep.mubr.bf16.mxu0 %v127_v1  ;;  %v182_v1 = vlaneseq }
  0x90   :  { %v1379_v2 = vshrl.u32 %v182_v1, 7  ;;  %vm889_vm0 = vcmp.lt.s32.totalorder %v182_v1, 256 }
  0x92   :  { %v188_v3 = vsub.s32 1, %v1379_v2 }
  0x94   :  { %v1385_v5 = vrot.slane %v180_v4, %v188_v3 }
  0x95   :  { %435 = vmatmul.mubr.bf16.gmra.mrb[20].mxu0 %v126_v6 }
  0x96   :  { %444 = vmatprep.mubr.bf16.mxu0 %v129_v7 }
  0x9d   :  { %445 = vmatmul.mubr.bf16.gmra.mrb[24].mxu0 %v128_v12 }
  0x9e   :  { %454 = vmatprep.mubr.bf16.mxu0 %v131_v13  ;;  %v184_v13 = vsub.s32 0, %v1379_v2 }
  0xa0   :  { %v1392_v17 = vrot.slane %v180_v4, %v184_v13 }
  0xa5   :  { %455 = vmatmul.mubr.bf16.gmra.mrb[28].mxu0 %v130_v18 }
  0xa6   :  { %464 = vmatprep.mubr.bf16.mxu0 %v133_v19 }
  0xad   :  { %465 = vmatmul.mubr.bf16.gmra.mrb[32].mxu0 %v132_v24 }
  0xae   :  { %474 = vmatprep.mubr.bf16.mxu0 %v135_v25 }
  0xb5   :  { %475 = vmatmul.mubr.bf16.gmra.mrb[36].mxu0 %v134_v30 }
  0xb6   :  { %484 = vmatprep.mubr.bf16.mxu0 %v137_v31 }
  0xbd   :  { %485 = vmatmul.mubr.bf16.gmra.mrb[40].mxu0 %v136_v36 }
  0xbe   :  { %494 = vmatprep.mubr.bf16.mxu0 %v139_v37 }
  0xc5   :  { %495 = vmatmul.mubr.bf16.gmra.mrb[44].mxu0 %v138_v42 }
  0xc6   :  { %504 = vmatprep.mubr.bf16.mxu0 %v141_v43 }
  0xcd   :  { %505 = vmatmul.mubr.bf16.gmra.mrb[48].mxu0 %v140_v48 }
  0xce   :  { %514 = vmatprep.mubr.bf16.mxu0 %v143_v49 }
  0xd5   :  { %515 = vmatmul.mubr.bf16.gmra.mrb[52].mxu0 %v142_v54 }
  0xd6   :  { %524 = vmatprep.mubr.bf16.mxu0 %v145_v55 }
  0xdd   :  { %525 = vmatmul.mubr.bf16.gmra.mrb[56].mxu0 %v144_v60 }
  0xde   :  { %534 = vmatprep.mubr.bf16.mxu0 %v147_v61 }
  0xe5   :  { %535 = vmatmul.mubr.bf16.gmra.mrb[60].mxu0 %v146_v0 }
 0x140   :  { %v386_v6 = vpop.f32.mrb[0].mxu0 }
 0x141   :  { %v388_v7 = vpop.f32.mrb[1].mxu0  ;;  %v387_v23 = vadd.f32 %v386_v6, %v1392_v17 }
 0x142   :  { %v389_v8 = vadd.f32 %v388_v7, %v1385_v5  ;;  %v390_v9 = vpop.f32.mrb[2].mxu0 }
 0x143   :  { %v392_v10 = vpop.f32.mrb[3].mxu0  ;;  %v391_v26 = vadd.f32 %v390_v9, %v1392_v17 }
 0x144   :  { %v940_v11 = vmul.f32 -1.442695, %v389_v8  ;;  %v393_v12 = vadd.f32 %v392_v10, %v1385_v5 }
 0x146   :  { %1048 = vpow2.f32 %v940_v11  ;;  %v941_v14 = vmul.f32 -1.442695, %v393_v12 }
 0x148   :  { %1050 = vpow2.f32 %v941_v14  ;;  %v396_v15 = vpop.f32.mrb[4].mxu0  ;;  %v818_v14 = vld [vmem:[#allocation2] sm:$0x1] }
 0x149   :  { %v398_v16 = vpop.f32.mrb[5].mxu0  ;;  %v397_v37 = vadd.f32 %v396_v15, %v1392_v17 }
 0x14a   :  { %v399_v18 = vadd.f32 %v398_v16, %v1385_v5  ;;  %v400_v19 = vpop.f32.mrb[6].mxu0  ;;  %v1318_v16 = vmov 0  }
 0x14b   :  { %v402_v20 = vpop.f32.mrb[7].mxu0  ;;  %v401_v40 = vadd.f32 %v400_v19, %v1392_v17  ;;  %999 = vset.pattern.permute.xlu0 %v1318_v16 }
 0x14c   :  { %v942_v21 = vmul.f32 -1.442695, %v399_v18  ;;  %v403_v22 = vadd.f32 %v402_v20, %v1385_v5  ;;  %821 = vperm.xlu0 %999, %v818_v14  }
 0x14e   :  { %1052 = vpow2.f32 %v942_v21  ;;  %v943_v24 = vmul.f32 -1.442695, %v403_v22 }
 0x150   :  { %v1049_v25 = vpop.eup %1048  ;;  %1054 = vpow2.f32 %v943_v24  ;;  %v406_v27 = vpop.f32.mrb[8].mxu0 }
 0x151   :  { %v673_v28 = vadd.f32 1.0, %v1049_v25  ;;  %v408_v29 = vpop.f32.mrb[9].mxu0  ;;  %1056 = vtanh.f32 %v387_v23  ;;  %v407_v55 = vadd.f32 %v406_v27, %v1392_v17 }
 0x152   :  { %v1051_v30 = vpop.eup %1050  ;;  %v409_v31 = vadd.f32 %v408_v29, %v1385_v5  ;;  %v410_v32 = vpop.f32.mrb[10].mxu0 }
 0x153   :  { %1058 = vrcp.f32 %v673_v28  ;;  %v674_v33 = vadd.f32 1.0, %v1051_v30  ;;  %v412_v34 = vpop.f32.mrb[11].mxu0  ;;  %v411_v60 = vadd.f32 %v410_v32, %v1392_v17 }
 0x154   :  { %1060 = vtanh.f32 %v391_v26  ;;  %v944_v35 = vmul.f32 -1.442695, %v409_v31  ;;  %v413_v36 = vadd.f32 %v412_v34, %v1385_v5 }
 0x155   :  { %1062 = vrcp.f32 %v674_v33 }
 0x156   :  { %1064 = vpow2.f32 %v944_v35  ;;  %v945_v38 = vmul.f32 -1.442695, %v413_v36 }
 0x158   :  { %v1053_v39 = vpop.eup %1052  ;;  %1066 = vpow2.f32 %v945_v38  ;;  %v416_v41 = vpop.f32.mrb[12].mxu0 }
 0x159   :  { %v675_v42 = vadd.f32 1.0, %v1053_v39  ;;  %v418_v43 = vpop.f32.mrb[13].mxu0  ;;  %1068 = vtanh.f32 %v397_v37  ;;  %v417_v19 = vadd.f32 %v416_v41, %v1392_v17 }
 0x15a   :  { %v1055_v44 = vpop.eup %1054  ;;  %v419_v45 = vadd.f32 %v418_v43, %v1385_v5  ;;  %v420_v46 = vpop.f32.mrb[14].mxu0 }
 0x15b   :  { %1070 = vrcp.f32 %v675_v42  ;;  %v676_v47 = vadd.f32 1.0, %v1055_v44  ;;  %v422_v48 = vpop.f32.mrb[15].mxu0  ;;  %v1057_v49 = vpop.eup %1056  ;;  %v421_v24 = vadd.f32 %v420_v46, %v1392_v17 }
 0x15c   :  { %1072 = vtanh.f32 %v401_v40  ;;  %v946_v50 = vmul.f32 -1.442695, %v419_v45  ;;  %v423_v51 = vadd.f32 %v422_v48, %v1385_v5 }
 0x15d   :  { %v1059_v52 = vpop.eup %1058  ;;  %1074 = vrcp.f32 %v676_v47 }
 0x15e   :  { %v1061_v54 = vpop.eup %1060  ;;  %1076 = vpow2.f32 %v946_v50  ;;  %v947_v56 = vmul.f32 -1.442695, %v423_v51  ;;  %v1410_v57 = vmul.f32 %v1059_v52, %v1057_v49 }
 0x15f   :  { %v1063_v58 = vpop.eup %1062 }
 0x160   :  { %v1065_v59 = vpop.eup %1064  ;;  %1078 = vpow2.f32 %v947_v56  ;;  %v426_v61 = vpop.f32.mrb[16].mxu0  ;;  %v1414_v62 = vmul.f32 %v1063_v58, %v1061_v54 }
 0x161   :  { %v677_v63 = vadd.f32 1.0, %v1065_v59  ;;  %v428_v0 = vpop.f32.mrb[17].mxu0  ;;  %1080 = vtanh.f32 %v407_v55  ;;  %v427_v40 = vadd.f32 %v426_v61, %v1392_v17 }
 0x162   :  { %v1067_v3 = vpop.eup %1066  ;;  %v429_v4 = vadd.f32 %v428_v0, %v1385_v5  ;;  %v430_v6 = vpop.f32.mrb[18].mxu0  ;;  %v801_v7 = vpack.c.bf16 %v1414_v62, %v1410_v57 }
 0x163   :  { %1082 = vrcp.f32 %v677_v63  ;;  %v678_v8 = vadd.f32 1.0, %v1067_v3  ;;  %v432_v9 = vpop.f32.mrb[19].mxu0  ;;  %v1069_v10 = vpop.eup %1068  ;;  %v431_v45 = vadd.f32 %v430_v6, %v1392_v17 }
 0x164   :  { %1084 = vtanh.f32 %v411_v60  ;;  %v948_v11 = vmul.f32 -1.442695, %v429_v4  ;;  %v433_v12 = vadd.f32 %v432_v9, %v1385_v5 }
 0x165   :  { %v1071_v15 = vpop.eup %1070  ;;  %1086 = vrcp.f32 %v678_v8 }
 0x166   :  { %v1073_v18 = vpop.eup %1072  ;;  %1088 = vpow2.f32 %v948_v11  ;;  %v949_v20 = vmul.f32 -1.442695, %v433_v12  ;;  %v1421_v21 = vmul.f32 %v1071_v15, %v1069_v10 }
 0x167   :  { %v1075_v22 = vpop.eup %1074 }
 0x168   :  { %v1077_v23 = vpop.eup %1076  ;;  %1090 = vpow2.f32 %v949_v20  ;;  %v436_v25 = vpop.f32.mrb[20].mxu0  ;;  %v1424_v26 = vmul.f32 %v1075_v22, %v1073_v18 }
 0x169   :  { %v679_v27 = vadd.f32 1.0, %v1077_v23  ;;  %v438_v28 = vpop.f32.mrb[21].mxu0  ;;  %1092 = vtanh.f32 %v417_v19  ;;  %v437_v0 = vadd.f32 %v436_v25, %v1392_v17 }
 0x16a   :  { %v1079_v29 = vpop.eup %1078  ;;  %v439_v30 = vadd.f32 %v438_v28, %v1385_v5  ;;  %v440_v31 = vpop.f32.mrb[22].mxu0  ;;  %v802_v32 = vpack.c.bf16 %v1424_v26, %v1421_v21 }
 0x16b   :  { %1094 = vrcp.f32 %v679_v27  ;;  %v680_v33 = vadd.f32 1.0, %v1079_v29  ;;  %v442_v34 = vpop.f32.mrb[23].mxu0  ;;  %v1081_v35 = vpop.eup %1080  ;;  %v441_v9 = vadd.f32 %v440_v31, %v1392_v17 }
 0x16c   :  { %1096 = vtanh.f32 %v421_v24  ;;  %v950_v36 = vmul.f32 -1.442695, %v439_v30  ;;  %v443_v37 = vadd.f32 %v442_v34, %v1385_v5 }
 0x16d   :  { %v1083_v38 = vpop.eup %1082  ;;  %1098 = vrcp.f32 %v680_v33 }
 0x16e   :  { %v1085_v39 = vpop.eup %1084  ;;  %1100 = vpow2.f32 %v950_v36  ;;  %v951_v41 = vmul.f32 -1.442695, %v443_v37  ;;  %v1431_v42 = vmul.f32 %v1083_v38, %v1081_v35 }
 0x16f   :  { %v1087_v43 = vpop.eup %1086 }
 0x170   :  { %v1089_v44 = vpop.eup %1088  ;;  %1102 = vpow2.f32 %v951_v41  ;;  %v446_v46 = vpop.f32.mrb[24].mxu0  ;;  %v1434_v47 = vmul.f32 %v1087_v43, %v1085_v39 }
 0x171   :  { %v681_v48 = vadd.f32 1.0, %v1089_v44  ;;  %v448_v49 = vpop.f32.mrb[25].mxu0  ;;  %1104 = vtanh.f32 %v427_v40  ;;  %v447_v29 = vadd.f32 %v446_v46, %v1392_v17 }
 0x172   :  { %v1091_v50 = vpop.eup %1090  ;;  %v449_v51 = vadd.f32 %v448_v49, %v1385_v5  ;;  %v450_v52 = vpop.f32.mrb[26].mxu0  ;;  %v803_v54 = vpack.c.bf16 %v1434_v47, %v1431_v42 }
 0x173   :  { %1106 = vrcp.f32 %v681_v48  ;;  %v682_v55 = vadd.f32 1.0, %v1091_v50  ;;  %v452_v56 = vpop.f32.mrb[27].mxu0  ;;  %v1093_v58 = vpop.eup %1092  ;;  %v451_v35 = vadd.f32 %v450_v52, %v1392_v17 }
 0x174   :  { %1108 = vtanh.f32 %v431_v45  ;;  %v952_v59 = vmul.f32 -1.442695, %v449_v51  ;;  %v453_v60 = vadd.f32 %v452_v56, %v1385_v5 }
 0x175   :  { %v1095_v61 = vpop.eup %1094  ;;  %1110 = vrcp.f32 %v682_v55 }
 0x176   :  { %v1097_v63 = vpop.eup %1096  ;;  %1112 = vpow2.f32 %v952_v59  ;;  %v953_v3 = vmul.f32 -1.442695, %v453_v60  ;;  %v1441_v4 = vmul.f32 %v1095_v61, %v1093_v58 }
 0x177   :  { %v1099_v6 = vpop.eup %1098 }
 0x178   :  { %v1101_v8 = vpop.eup %1100  ;;  %1114 = vpow2.f32 %v953_v3  ;;  %v456_v10 = vpop.f32.mrb[28].mxu0  ;;  %v1444_v11 = vmul.f32 %v1099_v6, %v1097_v63 }
 0x179   :  { %v683_v12 = vadd.f32 1.0, %v1101_v8  ;;  %v458_v14 = vpop.f32.mrb[29].mxu0  ;;  %1116 = vtanh.f32 %v437_v0  ;;  %v457_v55 = vadd.f32 %v456_v10, %v1392_v17 }
 0x17a   :  { %v1103_v15 = vpop.eup %1102  ;;  %v459_v16 = vadd.f32 %v458_v14, %v1385_v5  ;;  %v460_v18 = vpop.f32.mrb[30].mxu0  ;;  %v804_v19 = vpack.c.bf16 %v1444_v11, %v1441_v4 }
 0x17b   :  { %1118 = vrcp.f32 %v683_v12  ;;  %v684_v20 = vadd.f32 1.0, %v1103_v15  ;;  %v462_v22 = vpop.f32.mrb[31].mxu0  ;;  %v1105_v23 = vpop.eup %1104  ;;  %v461_v61 = vadd.f32 %v460_v18, %v1392_v17 }
 0x17c   :  { %1120 = vtanh.f32 %v441_v9  ;;  %v954_v24 = vmul.f32 -1.442695, %v459_v16  ;;  %v463_v25 = vadd.f32 %v462_v22, %v1385_v5 }
 0x17d   :  { %v1107_v27 = vpop.eup %1106  ;;  %1122 = vrcp.f32 %v684_v20 }
 0x17e   :  { %v1109_v28 = vpop.eup %1108  ;;  %1124 = vpow2.f32 %v954_v24  ;;  %v955_v30 = vmul.f32 -1.442695, %v463_v25  ;;  %v1451_v31 = vmul.f32 %v1107_v27, %v1105_v23 }
 0x17f   :  { %v1111_v33 = vpop.eup %1110 }
 0x180   :  { %v1113_v34 = vpop.eup %1112  ;;  %1126 = vpow2.f32 %v955_v30  ;;  %v466_v36 = vpop.f32.mrb[32].mxu0  ;;  %v1454_v37 = vmul.f32 %v1111_v33, %v1109_v28 }
 0x181   :  { %v685_v38 = vadd.f32 1.0, %v1113_v34  ;;  %v468_v39 = vpop.f32.mrb[33].mxu0  ;;  %1128 = vtanh.f32 %v447_v29  ;;  %v467_v24 = vadd.f32 %v466_v36, %v1392_v17 }
 0x182   :  { %v1115_v40 = vpop.eup %1114  ;;  %v469_v41 = vadd.f32 %v468_v39, %v1385_v5  ;;  %v470_v43 = vpop.f32.mrb[34].mxu0  ;;  %v805_v44 = vpack.c.bf16 %v1454_v37, %v1451_v31 }
 0x183   :  { %1130 = vrcp.f32 %v685_v38  ;;  %v686_v45 = vadd.f32 1.0, %v1115_v40  ;;  %v472_v46 = vpop.f32.mrb[35].mxu0  ;;  %v1117_v48 = vpop.eup %1116  ;;  %v471_v30 = vadd.f32 %v470_v43, %v1392_v17 }
 0x184   :  { %1132 = vtanh.f32 %v451_v35  ;;  %v956_v49 = vmul.f32 -1.442695, %v469_v41  ;;  %v473_v50 = vadd.f32 %v472_v46, %v1385_v5 }
 0x185   :  { %v1119_v51 = vpop.eup %1118  ;;  %1134 = vrcp.f32 %v686_v45 }
 0x186   :  { %v1121_v52 = vpop.eup %1120  ;;  %1136 = vpow2.f32 %v956_v49  ;;  %v957_v56 = vmul.f32 -1.442695, %v473_v50  ;;  %v1461_v58 = vmul.f32 %v1119_v51, %v1117_v48 }
 0x187   :  { %v1123_v59 = vpop.eup %1122 }
 0x188   :  { %v1125_v60 = vpop.eup %1124  ;;  %1138 = vpow2.f32 %v957_v56  ;;  %v476_v63 = vpop.f32.mrb[36].mxu0  ;;  %v1464_v0 = vmul.f32 %v1123_v59, %v1121_v52 }
 0x189   :  { %v687_v3 = vadd.f32 1.0, %v1125_v60  ;;  %v478_v6 = vpop.f32.mrb[37].mxu0  ;;  %1140 = vtanh.f32 %v457_v55  ;;  %v477_v52 = vadd.f32 %v476_v63, %v1392_v17 }
 0x18a   :  { %v1127_v8 = vpop.eup %1126  ;;  %v479_v9 = vadd.f32 %v478_v6, %v1385_v5  ;;  %v480_v12 = vpop.f32.mrb[38].mxu0  ;;  %v806_v10 = vpack.c.bf16 %v1464_v0, %v1461_v58  ;;  %v1319_v0 = vmov 1966171168  }
 0x18b   :  { %1142 = vrcp.f32 %v687_v3  ;;  %v688_v14 = vadd.f32 1.0, %v1127_v8  ;;  %v482_v15 = vpop.f32.mrb[39].mxu0  ;;  %v1129_v16 = vpop.eup %1128 }
 0x18c   :  { %1144 = vtanh.f32 %v461_v61  ;;  %v958_v18 = vmul.f32 -1.442695, %v479_v9  ;;  %v483_v20 = vadd.f32 %v482_v15, %v1385_v5  ;;  %v481_v61 = vadd.f32 %v480_v12, %v1392_v17 }
 0x18d   :  { %v1131_v22 = vpop.eup %1130  ;;  %1146 = vrcp.f32 %v688_v14 }
 0x18e   :  { %v1133_v23 = vpop.eup %1132  ;;  %1148 = vpow2.f32 %v958_v18  ;;  %v959_v25 = vmul.f32 -1.442695, %v483_v20  ;;  %v1471_v27 = vmul.f32 %v1131_v22, %v1129_v16 }
 0x18f   :  { %v1135_v28 = vpop.eup %1134 }
 0x190   :  { %v1137_v29 = vpop.eup %1136  ;;  %1150 = vpow2.f32 %v959_v25  ;;  %v486_v33 = vpop.f32.mrb[40].mxu0  ;;  %v1474_v34 = vmul.f32 %v1135_v28, %v1133_v23 }
 0x191   :  { %v689_v35 = vadd.f32 1.0, %v1137_v29  ;;  %v488_v38 = vpop.f32.mrb[41].mxu0  ;;  %1152 = vtanh.f32 %v467_v24  ;;  %v487_v28 = vadd.f32 %v486_v33, %v1392_v17 }
 0x192   :  { %v1139_v39 = vpop.eup %1138  ;;  %v489_v40 = vadd.f32 %v488_v38, %v1385_v5  ;;  %v490_v41 = vpop.f32.mrb[42].mxu0  ;;  %v807_v36 = vpack.c.bf16 %v1474_v34, %v1471_v27 }
 0x193   :  { %1154 = vrcp.f32 %v689_v35  ;;  %v690_v45 = vadd.f32 1.0, %v1139_v39  ;;  %v492_v46 = vpop.f32.mrb[43].mxu0  ;;  %v1141_v48 = vpop.eup %1140  ;;  %v491_v39 = vadd.f32 %v490_v41, %v1392_v17 }
 0x194   :  { %1156 = vtanh.f32 %v471_v30  ;;  %v960_v43 = vmul.f32 -1.442695, %v489_v40  ;;  %v493_v49 = vadd.f32 %v492_v46, %v1385_v5 }
 0x195   :  { %v1143_v50 = vpop.eup %1142  ;;  %1158 = vrcp.f32 %v690_v45 }
 0x196   :  { %v1145_v51 = vpop.eup %1144  ;;  %1160 = vpow2.f32 %v960_v43  ;;  %v961_v55 = vmul.f32 -1.442695, %v493_v49  ;;  %v1481_v56 = vmul.f32 %v1143_v50, %v1141_v48 }
 0x197   :  { %v1147_v59 = vpop.eup %1146 }
 0x198   :  { %v1149_v60 = vpop.eup %1148  ;;  %1162 = vpow2.f32 %v961_v55  ;;  %v496_v3 = vpop.f32.mrb[44].mxu0  ;;  %v1484_v6 = vmul.f32 %v1147_v59, %v1145_v51 }
 0x199   :  { %v691_v8 = vadd.f32 1.0, %v1149_v60  ;;  %v498_v9 = vpop.f32.mrb[45].mxu0  ;;  %1164 = vtanh.f32 %v477_v52 }
 0x19a   :  { %v1151_v14 = vpop.eup %1150  ;;  %v499_v15 = vadd.f32 %v498_v9, %v1385_v5  ;;  %v500_v16 = vpop.f32.mrb[46].mxu0  ;;  %v808_v63 = vpack.c.bf16 %v1484_v6, %v1481_v56 }
 0x19b   :  { %1166 = vrcp.f32 %v691_v8  ;;  %v692_v18 = vadd.f32 1.0, %v1151_v14  ;;  %v502_v20 = vpop.f32.mrb[47].mxu0  ;;  %v1153_v22 = vpop.eup %1152  ;;  %v497_v8 = vadd.f32 %v496_v3, %v1392_v17 }
 0x19c   :  { %1168 = vtanh.f32 %v481_v61  ;;  %v962_v12 = vmul.f32 -1.442695, %v499_v15  ;;  %v503_v23 = vadd.f32 %v502_v20, %v1385_v5  ;;  %v501_v20 = vadd.f32 %v500_v16, %v1392_v17 }
 0x19d   :  { %v1155_v24 = vpop.eup %1154  ;;  %1170 = vrcp.f32 %v692_v18 }
 0x19e   :  { %v1157_v25 = vpop.eup %1156  ;;  %1172 = vpow2.f32 %v962_v12  ;;  %v963_v29 = vmul.f32 -1.442695, %v503_v23  ;;  %v785_v30 = vmul.f32 %v1155_v24, %v1153_v22 }
 0x19f   :  { %v1159_v35 = vpop.eup %1158 }
 0x1a0   :  { %v1161_v38 = vpop.eup %1160  ;;  %1174 = vpow2.f32 %v963_v29  ;;  %v506_v40 = vpop.f32.mrb[48].mxu0  ;;  %v786_v45 = vmul.f32 %v1159_v35, %v1157_v25 }
 0x1a1   :  { %v693_v46 = vadd.f32 1.0, %v1161_v38  ;;  %v508_v48 = vpop.f32.mrb[49].mxu0  ;;  %1176 = vtanh.f32 %v487_v28 }
 0x1a2   :  { %v1163_v43 = vpop.eup %1162  ;;  %v509_v49 = vadd.f32 %v508_v48, %v1385_v5  ;;  %v510_v50 = vpop.f32.mrb[50].mxu0  ;;  %v809_v51 = vpack.c.bf16 %v786_v45, %v785_v30 }
 0x1a3   :  { %1178 = vrcp.f32 %v693_v46  ;;  %v694_v33 = vadd.f32 1.0, %v1163_v43  ;;  %v512_v52 = vpop.f32.mrb[51].mxu0  ;;  %v1165_v55 = vpop.eup %1164 }
 0x1a4   :  { %1180 = vtanh.f32 %v491_v39  ;;  %v964_v59 = vmul.f32 -1.442695, %v509_v49  ;;  %v513_v60 = vadd.f32 %v512_v52, %v1385_v5  ;;  %972 = vmatprep.subr.bf16.mxu1 %v809_v51  ;;  %v507_v39 = vadd.f32 %v506_v40, %v1392_v17 }
 0x1a5   :  { %v1167_v41 = vpop.eup %1166  ;;  %1182 = vrcp.f32 %v694_v33  ;;  %973 = vmatpush3.bf16.xpose.msra.mxu1 %v801_v7  ;;  %v511_v49 = vadd.f32 %v510_v50, %v1392_v17 }
 0x1a6   :  { %v1169_v61 = vpop.eup %1168  ;;  %1184 = vpow2.f32 %v964_v59  ;;  %v965_v9 = vmul.f32 -1.442695, %v513_v60  ;;  %v787_v14 = vmul.f32 %v1167_v41, %v1165_v55 }
 0x1a7   :  { %v1171_v15 = vpop.eup %1170 }
 0x1a8   :  { %v1173_v18 = vpop.eup %1172  ;;  %1186 = vpow2.f32 %v965_v9  ;;  %v516_v22 = vpop.f32.mrb[52].mxu0  ;;  %v788_v12 = vmul.f32 %v1171_v15, %v1169_v61 }
 0x1a9   :  { %v695_v23 = vadd.f32 1.0, %v1173_v18  ;;  %v518_v24 = vpop.f32.mrb[53].mxu0  ;;  %1188 = vtanh.f32 %v497_v8 }
 0x1aa   :  { %v1175_v25 = vpop.eup %1174  ;;  %v519_v57 = vadd.f32 %v518_v24, %v1385_v5  ;;  %v520_v62 = vpop.f32.mrb[54].mxu0  ;;  %v810_v7 = vpack.c.bf16 %v788_v12, %v787_v14  ;;  %v517_v14 = vadd.f32 %v516_v22, %v1392_v17 }
 0x1ab   :  { %1190 = vrcp.f32 %v695_v23  ;;  %v696_v3 = vadd.f32 1.0, %v1175_v25  ;;  %v522_v28 = vpop.f32.mrb[55].mxu0  ;;  %v1177_v29 = vpop.eup %1176  ;;  %v521_v23 = vadd.f32 %v520_v62, %v1392_v17 }
 0x1ac   :  { %1192 = vtanh.f32 %v501_v20  ;;  %v966_v30 = vmul.f32 -1.442695, %v519_v57  ;;  %v523_v35 = vadd.f32 %v522_v28, %v1385_v5  ;;  %974 = vmatprep.subr.bf16.mxu1 %v810_v7 }
 0x1ad   :  { %v1179_v16 = vpop.eup %1178  ;;  %1194 = vrcp.f32 %v696_v3  ;;  %975 = vmatpush3.bf16.xpose.msra.mxu1 %v802_v32 }
 0x1ae   :  { %v1181_v38 = vpop.eup %1180  ;;  %1196 = vpow2.f32 %v966_v30  ;;  %v967_v45 = vmul.f32 -1.442695, %v523_v35  ;;  %v789_v46 = vmul.f32 %v1179_v16, %v1177_v29 }
 0x1af   :  { %v1183_v48 = vpop.eup %1182 }
 0x1b0   :  { %v1185_v43 = vpop.eup %1184  ;;  %1198 = vpow2.f32 %v967_v45  ;;  %v526_v51 = vpop.f32.mrb[56].mxu0  ;;  %v790_v33 = vmul.f32 %v1183_v48, %v1181_v38 }
 0x1b1   :  { %v697_v52 = vadd.f32 1.0, %v1185_v43  ;;  %v528_v55 = vpop.f32.mrb[57].mxu0  ;;  %1200 = vtanh.f32 %v507_v39  ;;  %v527_v38 = vadd.f32 %v526_v51, %v1392_v17 }
 0x1b2   :  { %v1187_v59 = vpop.eup %1186  ;;  %v529_v21 = vadd.f32 %v528_v55, %v1385_v5  ;;  %v530_v26 = vpop.f32.mrb[58].mxu0  ;;  %v811_v32 = vpack.c.bf16 %v790_v33, %v789_v46 }
 0x1b3   :  { %1202 = vrcp.f32 %v697_v52  ;;  %v698_v40 = vadd.f32 1.0, %v1187_v59  ;;  %v532_v60 = vpop.f32.mrb[59].mxu0  ;;  %v1189_v41 = vpop.eup %1188  ;;  %v531_v43 = vadd.f32 %v530_v26, %v1392_v17 }
 0x1b4   :  { %1204 = vtanh.f32 %v511_v49  ;;  %v968_v61 = vmul.f32 -1.442695, %v529_v21  ;;  %v533_v8 = vadd.f32 %v532_v60, %v1385_v5  ;;  %976 = vmatprep.subr.bf16.mxu1 %v811_v32 }
 0x1b5   :  { %v1191_v50 = vpop.eup %1190  ;;  %1206 = vrcp.f32 %v698_v40  ;;  %977 = vmatpush3.bf16.xpose.msra.mxu1 %v803_v54 }
 0x1b6   :  { %v1193_v9 = vpop.eup %1192  ;;  %1208 = vpow2.f32 %v968_v61  ;;  %v969_v15 = vmul.f32 -1.442695, %v533_v8  ;;  %v791_v18 = vmul.f32 %v1191_v50, %v1189_v41 }
 0x1b7   :  { %v1195_v20 = vpop.eup %1194 }
 0x1b8   :  { %v1197_v12 = vpop.eup %1196  ;;  %1210 = vpow2.f32 %v969_v15  ;;  %v536_v24 = vpop.f32.mrb[60].mxu0  ;;  %v792_v25 = vmul.f32 %v1195_v20, %v1193_v9 }
 0x1b9   :  { %v699_v57 = vadd.f32 1.0, %v1197_v12  ;;  %v538_v7 = vpop.f32.mrb[61].mxu0  ;;  %1212 = vtanh.f32 %v517_v14  ;;  %v537_v51 = vadd.f32 %v536_v24, %v1392_v17 }
 0x1ba   :  { %v1199_v3 = vpop.eup %1198  ;;  %v539_v42 = vadd.f32 %v538_v7, %v1385_v5  ;;  %v540_v47 = vpop.f32.mrb[62].mxu0  ;;  %v812_v54 = vpack.c.bf16 %v792_v25, %v791_v18 }
 0x1bb   :  { %1214 = vrcp.f32 %v699_v57  ;;  %v700_v22 = vadd.f32 1.0, %v1199_v3  ;;  %v542_v28 = vpop.f32.mrb[63].mxu0  ;;  %v1201_v29 = vpop.eup %1200  ;;  %v541_v32 = vadd.f32 %v540_v47, %v1392_v17 }
 0x1bc   :  { %1216 = vtanh.f32 %v521_v23  ;;  %v970_v30 = vmul.f32 -1.442695, %v539_v42  ;;  %v543_v35 = vadd.f32 %v542_v28, %v1385_v5  ;;  %978 = vmatprep.subr.bf16.mxu1 %v812_v54 }
 0x1bd   :  { %v1203_v62 = vpop.eup %1202  ;;  %1218 = vrcp.f32 %v700_v22  ;;  %979 = vmatpush3.bf16.xpose.msra.mxu1 %v804_v19 }
 0x1be   :  { %v1205_v16 = vpop.eup %1204  ;;  %1220 = vpow2.f32 %v970_v30  ;;  %v971_v39 = vmul.f32 -1.442695, %v543_v35  ;;  %v793_v45 = vmul.f32 %v1203_v62, %v1201_v29 }
 0x1bf   :  { %v1207_v46 = vpop.eup %1206 }
 0x1c0   :  { %v1209_v48 = vpop.eup %1208  ;;  %1222 = vpow2.f32 %v971_v39  ;;  %v794_v49 = vmul.f32 %v1207_v46, %v1205_v16 }
 0x1c1   :  { %v701_v5 = vadd.f32 1.0, %v1209_v48  ;;  %1224 = vtanh.f32 %v527_v38 }
 0x1c2   :  { %v1211_v33 = vpop.eup %1210  ;;  %v813_v52 = vpack.c.bf16 %v794_v49, %v793_v45 }
 0x1c3   :  { %1226 = vrcp.f32 %v701_v5  ;;  %v702_v55 = vadd.f32 1.0, %v1211_v33  ;;  %v1213_v4 = vpop.eup %1212 }
 0x1c4   :  { %1228 = vtanh.f32 %v531_v43  ;;  %980 = vmatprep.subr.bf16.mxu1 %v813_v52 }
 0x1c5   :  { %v1215_v11 = vpop.eup %1214  ;;  %1230 = vrcp.f32 %v702_v55  ;;  %981 = vmatpush3.bf16.xpose.msra.mxu1 %v805_v44 }
 0x1c6   :  { %v1217_v19 = vpop.eup %1216  ;;  %v795_v59 = vmul.f32 %v1215_v11, %v1213_v4  ;;  %1232 = vtanh.f32 %v537_v51 }
 0x1c7   :  { %v1219_v21 = vpop.eup %1218 }
 0x1c8   :  { %v1221_v26 = vpop.eup %1220  ;;  %v796_v40 = vmul.f32 %v1219_v21, %v1217_v19 }
 0x1c9   :  { %v703_v60 = vadd.f32 1.0, %v1221_v26 }
 0x1ca   :  { %v1223_v41 = vpop.eup %1222  ;;  %v814_v61 = vpack.c.bf16 %v796_v40, %v795_v59 }
 0x1cb   :  { %1234 = vrcp.f32 %v703_v60  ;;  %v704_v8 = vadd.f32 1.0, %v1223_v41  ;;  %v1225_v50 = vpop.eup %1224  ;;  %v822_v58 = vpop.permute.xlu0 %821 }
 0x1cc   :  { %1236 = vtanh.f32 %v541_v32  ;;  %982 = vmatprep.subr.bf16.mxu1 %v814_v61  ;;  %v827_v57 = vrot.slane %v822_v58, %v184_v13 }
 0x1cd   :  { %v1227_v31 = vpop.eup %1226  ;;  %1238 = vrcp.f32 %v704_v8  ;;  %983 = vmatpush3.bf16.xpose.msra.mxu1 %v806_v10  ;;  %v873_v10 = vunpack.c.l.s4 %v1319_v0 }
 0x1ce   :  { %v1229_v37 = vpop.eup %1228  ;;  %v797_v44 = vmul.f32 %v1227_v31, %v1225_v50 }
 0x1cf   :  { %v1231_v9 = vpop.eup %1230  ;;  %v874_v27 = vunpack.c.0.s8 %v873_v10 }
 0x1d0   :  { %v798_v17 = vmul.f32 %v1231_v9, %v1229_v37  ;;  %v1233_v15 = vpop.eup %1232 }
 0x1d1   :  { %v877_v42 = vsub.s32 %v874_v27, %v1379_v2 }
 0x1d2   :  { %v815_v14 = vpack.c.bf16 %v798_v17, %v797_v44 }
 0x1d4   :  { %984 = vmatprep.subr.bf16.mxu1 %v815_v14 }
 0x1d5   :  { %v1235_v18 = vpop.eup %1234  ;;  %985 = vmatpush3.bf16.xpose.msra.mxu1 %v807_v36 }
 0x1d6   :  { %v1237_v20 = vpop.eup %1236  ;;  %v799_v12 = vmul.f32 %v1235_v18, %v1233_v15 }
 0x1d7   :  { %v1239_v23 = vpop.eup %1238 }
 0x1d8   :  { %v800_v24 = vmul.f32 %v1239_v23, %v1237_v20 }
 0x1da   :  { %v816_v25 = vpack.c.bf16 %v800_v24, %v799_v12 }
 0x1dc   :  { %986 = vmatprep.subr.bf16.mxu1 %v816_v25 }
 0x1dd   :  { %987 = vmatpush3.bf16.xpose.msra.mxu1 %v808_v63 }
 0x1e4   :  { %989 = vmatmul.mubr.bf16.vlgmr.msra.gmra.mrb[0].mxu1 %v1407_v53 }
 0x2b7   :  { %v862_v34 = vpop.f32.mrb[0].mxu1 }
 0x2b8   :  { %v863_v36 = vadd.f32 %v862_v34, %v827_v57  ;;  %v864_v7 = vpop.f32.mrb[1].mxu1 }
 0x2b9   :  { %v865_v3 = vadd.f32 %v864_v7, %v827_v57  ;;  %v866_v47 = vpop.f32.mrb[2].mxu1 }
 0x2ba   :  { %v867_v54 = vpop.f32.mrb[3].mxu1 }
 0x2bb   :  { %v871_v22 = vcombine.low %v863_v36, %v865_v3 }
 0x2bd   :  { %v878_v56 = vrot.slane %v871_v22, %v877_v42 }
 0x2bf   :  { %v885_v53 = vrot.slane %v878_v56, %v877_v42 }
 0x2c1   :  { %891 = vst.msk [vmem:[#allocation8] sm:$0x3] %vm889_vm0, %v885_v53 }
 0x2c2   :  { %1295 = shalt.err (!%p1292_p6)
}
 0x2c3   :  { %s1296_s28 = scalar_lea.hbm %s1556_s5, 32 }
 0x2c4   :  { %p1297_p7 = scmp.ne.s32.totalorder %s1556_s5, %s1296_s28  ;;  %p1300_p8 = scmp.lt.u32.totalorder %s1296_s28, %s1556_s5 }
 0x2c6   :  { %p1302_p9 = pnand %p1300_p8, %p1297_p7 }
 0x2c8   :  { %1305 = shalt.err (!%p1302_p9)
}
 0x2c9   :  { %901 = dma.vmem_to_hbm [thread:$0]  %s899_s24, 32, %s1556_s5, [#allocation5]  }
 0x2ca   :  { %1310 = dma.done.wait [#allocation5], 32  }
 0x2cb   :  { %1311 = vsyncadd [#allocation5], 4294967264 }
 0x2cc   :  { %905 = vsyncpa [#allocation4], 1 }
 0x2cd   :  { %906 = vsyncpa [#allocation7], 1 }
 0x2ce   :  { %907 = vsyncpa [#allocation5], 1 }

</bundles_post_ra>
